<compile_context>
chip_gen: v7x
topology: tpu7x:2x2x1
jax: 0.10.0
libtpu: 0.0.40
codegen_flags: <defaults>
</compile_context>

<pallas_src>
import functools

import jax
import jax.numpy as jnp
from jax.experimental import pallas as pl
from jax.experimental.pallas import tpu as pltpu

HIDDEN_SIZES = [256, 128, 64, 32]
OUTPUT_SIZE = 1
LANE = 128
SUBLANE = 8
MAX_TILE = 1024          # cap on per-grid-step batch rows


def _round_up(x, m):
    return (x + m - 1) // m * m


def mlp_kernel(x_ref,
               w1_ref, b1_ref,
               w2_ref, b2_ref,
               w3_ref, b3_ref,
               w4_ref, b4_ref,
               w5_ref, b5_ref,
               o_ref):
    """x tile (bt, F) f32; weights bf16 / biases f32 (lane-padded); out (bt, 1) f32."""
    mm_dtype = w1_ref.dtype                       # bf16 (or f32 if use_bf16=False)

    def dense(h, w_ref, b_ref):
        acc = jnp.dot(h, w_ref[...], preferred_element_type=jnp.float32)
        return acc + b_ref[...]                   # bias add + ReLU stay f32 (VPU native)

    h = x_ref[...].astype(mm_dtype)               # in-kernel cast (no wrapper pass)
    h = jnp.maximum(dense(h, w1_ref, b1_ref), 0.0).astype(mm_dtype)
    h = jnp.maximum(dense(h, w2_ref, b2_ref), 0.0).astype(mm_dtype)
    h = jnp.maximum(dense(h, w3_ref, b3_ref), 0.0).astype(mm_dtype)
    h = jnp.maximum(dense(h, w4_ref, b4_ref), 0.0).astype(mm_dtype)

    acc5 = jnp.dot(h, w5_ref[...], preferred_element_type=jnp.float32)
    b5 = b5_ref[...]
    # Only column 0 of the (padded) last layer is live: store a single f32
    # column -> 4 B/row of HBM writeback instead of a (bt, 128) f32 slab.
    o_ref[...] = (acc5[:, :1] + b5[:, :1]).astype(o_ref.dtype)


def prepare_params(params, *, use_bf16=True):
    """Pad + cast parameters ONCE, outside the per-call hot path.

    params: list of (W [in, out], b [1, out]) float32 (nn.Linear weights, transposed).
    Returns a flat tuple (w1, b1, ..., w5, b5): weights in matmul dtype, biases f32.
    """
    mm_dtype = jnp.bfloat16 if use_bf16 else jnp.float32
    flat = []
    for li, (w, b) in enumerate(params):
        in_dim, out_dim = w.shape
        # Layer-1 contraction dim stays = F (just sublane-aligned, no dead lanes);
        # all other feature dims are padded to full 128-lane width.  Padded
        # rows/cols/bias lanes are zero, so dead lanes stay exactly 0 (ReLU(0)=0).
        in_p = _round_up(in_dim, SUBLANE) if li == 0 else _round_up(in_dim, LANE)
        out_p = _round_up(out_dim, LANE)
        w_p = (jnp.zeros((in_p, out_p), jnp.float32)
               .at[:in_dim, :out_dim].set(w).astype(mm_dtype))
        b_p = jnp.zeros((1, out_p), jnp.float32).at[:, :b.shape[1]].set(b)
        flat.extend([w_p, b_p])
    return tuple(flat)


@functools.partial(jax.jit, static_argnames=("max_tile",))
def deep_regression_forward(x, flat_params, *, max_tile=MAX_TILE):
    """x: [B, input_size] float32; flat_params: output of prepare_params. -> [B, 1] f32."""
    B, F = x.shape
    F_k = flat_params[0].shape[0]          # kernel-side input width (>= F, 8-aligned)

    # B-dependent batch tile: one step for small/medium B, capped at max_tile so
    # large B yields a grid >= 2 (shardable across both v7x TensorCores via
    # dimension_semantics=("parallel",); a single big step remains best on v5e/v6e).
    bt = _round_up(max(B, SUBLANE), SUBLANE) if B <= max_tile else max_tile
    B_pad = _round_up(B, bt)
    grid = (B_pad // bt,)

    if B_pad != B or F_k != F:
        x = jnp.pad(x, ((0, B_pad - B), (0, F_k - F)))   # batch rows (+rare feat align)

    in_specs = [pl.BlockSpec((bt, F_k), lambda i: (i, 0))]
    # Grid-invariant weight/bias blocks (<250 KB total, resident in VMEM).
    in_specs += [pl.BlockSpec(a.shape, lambda i: (0, 0)) for a in flat_params]

    # Advisory cost estimate so XLA schedules around the custom call.
    flops = 2 * B_pad * sum(int(w.shape[0]) * int(w.shape[1])
                            for w in flat_params[0::2])
    bytes_accessed = (x.size * x.dtype.itemsize
                      + sum(a.size * a.dtype.itemsize for a in flat_params)
                      + B_pad * 4)
    cost = pl.CostEstimate(flops=flops, transcendentals=0,
                           bytes_accessed=bytes_accessed)

    out = pl.pallas_call(
        mlp_kernel,
        out_shape=jax.ShapeDtypeStruct((B_pad, 1), jnp.float32),
        grid_spec=pltpu.PrefetchScalarGridSpec(
            num_scalar_prefetch=0,
            grid=grid,
            in_specs=in_specs,
            out_specs=pl.BlockSpec((bt, 1), lambda i: (i, 0)),
        ),
        compiler_params=pltpu.CompilerParams(
            dimension_semantics=("parallel",),
            vmem_limit_bytes=32 * 1024 * 1024,   # >= v5e default, safe on all gens
        ),
        cost_estimate=cost,
    )(x, *flat_params)

    return out[:B]                         # (B, 1); row slice fuses under jit


def init_params(key, input_size):
    """Deterministic synthetic init (matches nn.Linear shapes, transposed)."""
    sizes = [input_size] + HIDDEN_SIZES + [OUTPUT_SIZE]
    params = []
    for i in range(len(sizes) - 1):
        fan_in, fan_out = sizes[i], sizes[i + 1]
        key, kw, kb = jax.random.split(key, 3)
        bound = 1.0 / (fan_in ** 0.5)
        w = jax.random.uniform(kw, (fan_in, fan_out), jnp.float32, -bound, bound)
        b = jax.random.uniform(kb, (1, fan_out), jnp.float32, -bound, bound)
        params.append((w, b))
    return params


def reference_forward(x, params):
    h = x
    for i, (w, b) in enumerate(params):
        h = h @ w + b
        if i < len(params) - 1:
            h = jnp.maximum(h, 0.0)
    return h


if __name__ == "__main__":
    key = jax.random.PRNGKey(0)
    key, kx, kx2 = jax.random.split(key, 3)

    input_size = 64      # X_train_tensor.shape[1] analogue
    batch = 16           # small demo shape -> single grid step

    x = jax.random.normal(kx, (batch, input_size), jnp.float32)
    params = init_params(key, input_size)
    flat_params = prepare_params(params)      # pad/cast ONCE, outside the hot path

    out = jax.block_until_ready(deep_regression_forward(x, flat_params))
    ref = reference_forward(x, params)
    assert out.shape == (batch, OUTPUT_SIZE)
    max_err = float(jnp.max(jnp.abs(out - ref)))
    assert max_err < 5e-2, f"mismatch vs f32 reference (max_err={max_err})"

    # Ragged batch + multi-tile grid path (tiny tile cap -> batch pad and grid of 2).
    x2 = jax.random.normal(kx2, (10, input_size), jnp.float32)
    out2 = jax.block_until_ready(deep_regression_forward(x2, flat_params, max_tile=8))
    ref2 = reference_forward(x2, params)
    assert out2.shape == (10, OUTPUT_SIZE)
    assert float(jnp.max(jnp.abs(out2 - ref2))) < 5e-2

    print("KERNEL_OK")
</pallas_src>

<mosaic_0001>
module attributes {stable_mosaic.version = 11 : i64} {
  func.func @mlp_kernel(%arg0: i32, %arg1: memref<16x64xf32, #tpu.memory_space<vmem>>, %arg2: memref<64x256xbf16, #tpu.memory_space<vmem>>, %arg3: memref<1x256xf32, #tpu.memory_space<vmem>>, %arg4: memref<256x128xbf16, #tpu.memory_space<vmem>>, %arg5: memref<1x128xf32, #tpu.memory_space<vmem>>, %arg6: memref<128x128xbf16, #tpu.memory_space<vmem>>, %arg7: memref<1x128xf32, #tpu.memory_space<vmem>>, %arg8: memref<128x128xbf16, #tpu.memory_space<vmem>>, %arg9: memref<1x128xf32, #tpu.memory_space<vmem>>, %arg10: memref<128x128xbf16, #tpu.memory_space<vmem>>, %arg11: memref<1x128xf32, #tpu.memory_space<vmem>>, %arg12: memref<16x1xf32, #tpu.memory_space<vmem>>) attributes {dimension_semantics = [#tpu.dimension_semantics<parallel>], iteration_bounds = array<i64: 1>, scalar_prefetch = 0 : i64, scratch_operands = 0 : i64, tpu.core_type = #tpu.core_type<tc>, window_params = [{transform_indices = @transform_0, window_bounds = array<i64: 16, 64>}, {pipeline_mode = #tpu.pipeline_mode<synchronous>, transform_indices = @transform_1, window_bounds = array<i64: 64, 256>}, {pipeline_mode = #tpu.pipeline_mode<synchronous>, transform_indices = @transform_2, window_bounds = array<i64: 1, 256>}, {pipeline_mode = #tpu.pipeline_mode<synchronous>, transform_indices = @transform_3, window_bounds = array<i64: 256, 128>}, {pipeline_mode = #tpu.pipeline_mode<synchronous>, transform_indices = @transform_4, window_bounds = array<i64: 1, 128>}, {pipeline_mode = #tpu.pipeline_mode<synchronous>, transform_indices = @transform_5, window_bounds = array<i64: 128, 128>}, {pipeline_mode = #tpu.pipeline_mode<synchronous>, transform_indices = @transform_6, window_bounds = array<i64: 1, 128>}, {pipeline_mode = #tpu.pipeline_mode<synchronous>, transform_indices = @transform_7, window_bounds = array<i64: 128, 128>}, {pipeline_mode = #tpu.pipeline_mode<synchronous>, transform_indices = @transform_8, window_bounds = array<i64: 1, 128>}, {pipeline_mode = #tpu.pipeline_mode<synchronous>, transform_indices = @transform_9, window_bounds = array<i64: 128, 128>}, {pipeline_mode = #tpu.pipeline_mode<synchronous>, transform_indices = @transform_10, window_bounds = array<i64: 1, 128>}, {transform_indices = @transform_11, window_bounds = array<i64: 16, 1>}]} {
    %c0 = arith.constant 0 : index
    %c0_0 = arith.constant 0 : index
    %0 = vector.load %arg1[%c0, %c0_0] : memref<16x64xf32, #tpu.memory_space<vmem>>, vector<16x64xf32>
    %1 = arith.truncf %0 : vector<16x64xf32> to vector<16x64xbf16>
    %c0_1 = arith.constant 0 : index
    %c0_2 = arith.constant 0 : index
    %2 = vector.load %arg2[%c0_1, %c0_2] : memref<64x256xbf16, #tpu.memory_space<vmem>>, vector<64x256xbf16>
    %cst = arith.constant dense<0.000000e+00> : vector<16x256xf32>
    %3 = tpu.matmul %1, %2, %cst {dimension_numbers = #tpu.dot_dimension_numbers<[1], [0], [0], [1], [0, 0, 1, 1], [], []>} : vector<16x64xbf16>, vector<64x256xbf16>, vector<16x256xf32> -> vector<16x256xf32>
    %c0_3 = arith.constant 0 : index
    %c0_4 = arith.constant 0 : index
    %4 = vector.load %arg3[%c0_3, %c0_4] : memref<1x256xf32, #tpu.memory_space<vmem>>, vector<1x256xf32>
    %5 = vector.broadcast %4 : vector<1x256xf32> to vector<16x256xf32>
    %6 = arith.addf %3, %5 : vector<16x256xf32>
    %cst_5 = arith.constant 0.000000e+00 : f32
    %7 = vector.broadcast %cst_5 : f32 to vector<16x256xf32>
    %8 = arith.maximumf %6, %7 : vector<16x256xf32>
    %9 = arith.truncf %8 : vector<16x256xf32> to vector<16x256xbf16>
    %c0_6 = arith.constant 0 : index
    %c0_7 = arith.constant 0 : index
    %10 = vector.load %arg4[%c0_6, %c0_7] : memref<256x128xbf16, #tpu.memory_space<vmem>>, vector<256x128xbf16>
    %cst_8 = arith.constant dense<0.000000e+00> : vector<16x128xf32>
    %11 = tpu.matmul %9, %10, %cst_8 {dimension_numbers = #tpu.dot_dimension_numbers<[1], [0], [0], [1], [0, 0, 1, 1], [], []>} : vector<16x256xbf16>, vector<256x128xbf16>, vector<16x128xf32> -> vector<16x128xf32>
    %c0_9 = arith.constant 0 : index
    %c0_10 = arith.constant 0 : index
    %12 = vector.load %arg5[%c0_9, %c0_10] : memref<1x128xf32, #tpu.memory_space<vmem>>, vector<1x128xf32>
    %13 = vector.broadcast %12 : vector<1x128xf32> to vector<16x128xf32>
    %14 = arith.addf %11, %13 : vector<16x128xf32>
    %cst_11 = arith.constant 0.000000e+00 : f32
    %15 = vector.broadcast %cst_11 : f32 to vector<16x128xf32>
    %16 = arith.maximumf %14, %15 : vector<16x128xf32>
    %17 = arith.truncf %16 : vector<16x128xf32> to vector<16x128xbf16>
    %c0_12 = arith.constant 0 : index
    %c0_13 = arith.constant 0 : index
    %18 = vector.load %arg6[%c0_12, %c0_13] : memref<128x128xbf16, #tpu.memory_space<vmem>>, vector<128x128xbf16>
    %cst_14 = arith.constant dense<0.000000e+00> : vector<16x128xf32>
    %19 = tpu.matmul %17, %18, %cst_14 {dimension_numbers = #tpu.dot_dimension_numbers<[1], [0], [0], [1], [0, 0, 1, 1], [], []>} : vector<16x128xbf16>, vector<128x128xbf16>, vector<16x128xf32> -> vector<16x128xf32>
    %c0_15 = arith.constant 0 : index
    %c0_16 = arith.constant 0 : index
    %20 = vector.load %arg7[%c0_15, %c0_16] : memref<1x128xf32, #tpu.memory_space<vmem>>, vector<1x128xf32>
    %21 = vector.broadcast %20 : vector<1x128xf32> to vector<16x128xf32>
    %22 = arith.addf %19, %21 : vector<16x128xf32>
    %cst_17 = arith.constant 0.000000e+00 : f32
    %23 = vector.broadcast %cst_17 : f32 to vector<16x128xf32>
    %24 = arith.maximumf %22, %23 : vector<16x128xf32>
    %25 = arith.truncf %24 : vector<16x128xf32> to vector<16x128xbf16>
    %c0_18 = arith.constant 0 : index
    %c0_19 = arith.constant 0 : index
    %26 = vector.load %arg8[%c0_18, %c0_19] : memref<128x128xbf16, #tpu.memory_space<vmem>>, vector<128x128xbf16>
    %cst_20 = arith.constant dense<0.000000e+00> : vector<16x128xf32>
    %27 = tpu.matmul %25, %26, %cst_20 {dimension_numbers = #tpu.dot_dimension_numbers<[1], [0], [0], [1], [0, 0, 1, 1], [], []>} : vector<16x128xbf16>, vector<128x128xbf16>, vector<16x128xf32> -> vector<16x128xf32>
    %c0_21 = arith.constant 0 : index
    %c0_22 = arith.constant 0 : index
    %28 = vector.load %arg9[%c0_21, %c0_22] : memref<1x128xf32, #tpu.memory_space<vmem>>, vector<1x128xf32>
    %29 = vector.broadcast %28 : vector<1x128xf32> to vector<16x128xf32>
    %30 = arith.addf %27, %29 : vector<16x128xf32>
    %cst_23 = arith.constant 0.000000e+00 : f32
    %31 = vector.broadcast %cst_23 : f32 to vector<16x128xf32>
    %32 = arith.maximumf %30, %31 : vector<16x128xf32>
    %33 = arith.truncf %32 : vector<16x128xf32> to vector<16x128xbf16>
    %c0_24 = arith.constant 0 : index
    %c0_25 = arith.constant 0 : index
    %34 = vector.load %arg10[%c0_24, %c0_25] : memref<128x128xbf16, #tpu.memory_space<vmem>>, vector<128x128xbf16>
    %cst_26 = arith.constant dense<0.000000e+00> : vector<16x128xf32>
    %35 = tpu.matmul %33, %34, %cst_26 {dimension_numbers = #tpu.dot_dimension_numbers<[1], [0], [0], [1], [0, 0, 1, 1], [], []>} : vector<16x128xbf16>, vector<128x128xbf16>, vector<16x128xf32> -> vector<16x128xf32>
    %c0_27 = arith.constant 0 : index
    %c0_28 = arith.constant 0 : index
    %36 = vector.load %arg11[%c0_27, %c0_28] : memref<1x128xf32, #tpu.memory_space<vmem>>, vector<1x128xf32>
    %37 = vector.extract_strided_slice %35 {offsets = [0, 0], sizes = [16, 1], strides = [1, 1]} : vector<16x128xf32> to vector<16x1xf32>
    %38 = vector.extract_strided_slice %36 {offsets = [0, 0], sizes = [1, 1], strides = [1, 1]} : vector<1x128xf32> to vector<1x1xf32>
    %39 = vector.broadcast %38 : vector<1x1xf32> to vector<16x1xf32>
    %40 = arith.addf %37, %39 : vector<16x1xf32>
    %c0_29 = arith.constant 0 : index
    %c0_30 = arith.constant 0 : index
    %41 = vector.load %arg12[%c0_29, %c0_30] : memref<16x1xf32, #tpu.memory_space<vmem>>, vector<16x1xf32>
    tpu.vector_store %arg12[%c0_29, %c0_30], %40 {strides = array<i32>} : memref<16x1xf32, #tpu.memory_space<vmem>>, vector<16x1xf32>,
    return
  }
  func.func @transform_0(%arg0: i32) -> (i32, i32) {
    %c0_i32 = arith.constant 0 : i32
    %c0_i32_0 = arith.constant 0 : i32
    return %arg0, %c0_i32 : i32, i32
  }
  func.func @transform_1(%arg0: i32) -> (i32, i32) {
    %c0_i32 = arith.constant 0 : i32
    %c0_i32_0 = arith.constant 0 : i32
    %c0_i32_1 = arith.constant 0 : i32
    return %c0_i32, %c0_i32_0 : i32, i32
  }
  func.func @transform_2(%arg0: i32) -> (i32, i32) {
    %c0_i32 = arith.constant 0 : i32
    %c0_i32_0 = arith.constant 0 : i32
    %c0_i32_1 = arith.constant 0 : i32
    return %c0_i32, %c0_i32_0 : i32, i32
  }
  func.func @transform_3(%arg0: i32) -> (i32, i32) {
    %c0_i32 = arith.constant 0 : i32
    %c0_i32_0 = arith.constant 0 : i32
    %c0_i32_1 = arith.constant 0 : i32
    return %c0_i32, %c0_i32_0 : i32, i32
  }
  func.func @transform_4(%arg0: i32) -> (i32, i32) {
    %c0_i32 = arith.constant 0 : i32
    %c0_i32_0 = arith.constant 0 : i32
    %c0_i32_1 = arith.constant 0 : i32
    return %c0_i32, %c0_i32_0 : i32, i32
  }
  func.func @transform_5(%arg0: i32) -> (i32, i32) {
    %c0_i32 = arith.constant 0 : i32
    %c0_i32_0 = arith.constant 0 : i32
    %c0_i32_1 = arith.constant 0 : i32
    return %c0_i32, %c0_i32_0 : i32, i32
  }
  func.func @transform_6(%arg0: i32) -> (i32, i32) {
    %c0_i32 = arith.constant 0 : i32
    %c0_i32_0 = arith.constant 0 : i32
    %c0_i32_1 = arith.constant 0 : i32
    return %c0_i32, %c0_i32_0 : i32, i32
  }
  func.func @transform_7(%arg0: i32) -> (i32, i32) {
    %c0_i32 = arith.constant 0 : i32
    %c0_i32_0 = arith.constant 0 : i32
    %c0_i32_1 = arith.constant 0 : i32
    return %c0_i32, %c0_i32_0 : i32, i32
  }
  func.func @transform_8(%arg0: i32) -> (i32, i32) {
    %c0_i32 = arith.constant 0 : i32
    %c0_i32_0 = arith.constant 0 : i32
    %c0_i32_1 = arith.constant 0 : i32
    return %c0_i32, %c0_i32_0 : i32, i32
  }
  func.func @transform_9(%arg0: i32) -> (i32, i32) {
    %c0_i32 = arith.constant 0 : i32
    %c0_i32_0 = arith.constant 0 : i32
    %c0_i32_1 = arith.constant 0 : i32
    return %c0_i32, %c0_i32_0 : i32, i32
  }
  func.func @transform_10(%arg0: i32) -> (i32, i32) {
    %c0_i32 = arith.constant 0 : i32
    %c0_i32_0 = arith.constant 0 : i32
    %c0_i32_1 = arith.constant 0 : i32
    return %c0_i32, %c0_i32_0 : i32, i32
  }
  func.func @transform_11(%arg0: i32) -> (i32, i32) {
    %c0_i32 = arith.constant 0 : i32
    %c0_i32_0 = arith.constant 0 : i32
    return %arg0, %c0_i32 : i32, i32
  }
}

</mosaic_0001>

<bundles_post_ra>
// kernel: deep_regression_forward.1
= control target key start
LH: loop header
LB: loop body
LE: loop exit
PB: predicated region body
PF: predicated region fallthrough
CT: control target
= control target key end

     0   :  { %16 = vsyncpa [#allocation3], 0  ;;  %s1352_s0 = inlined_call_operand.hbm [shape: f32[16,64], index: 0, kind: input, shape index: {}]   ;;  %s1353_s1 = inlined_call_operand.hbm [shape: bf16[64,256], index: 1, kind: input, shape index: {}]   ;;  %s1354_s2 = inlined_call_operand.vmem [shape: f32[1,256], index: 2, kind: input, shape index: {}]   ;;  %s1355_s3 = inlined_call_operand.hbm [shape: bf16[256,128], index: 3, kind: input, shape index: {}]   ;;  %s1356_s4 = inlined_call_operand.vmem [shape: f32[1,128], index: 4, kind: input, shape index: {}]   ;;  %s1357_s5 = inlined_call_operand.hbm [shape: bf16[128,128], index: 5, kind: input, shape index: {}]   ;;  %s1358_s6 = inlined_call_operand.vmem [shape: f32[1,128], index: 6, kind: input, shape index: {}]   ;;  %s1359_s7 = inlined_call_operand.hbm [shape: bf16[128,128], index: 7, kind: input, shape index: {}]   ;;  %s1360_s8 = inlined_call_operand.vmem [shape: f32[1,128], index: 8, kind: input, shape index: {}]   ;;  %s1361_s9 = inlined_call_operand.hbm [shape: bf16[128,128], index: 9, kind: input, shape index: {}]   ;;  %s1362_s10 = inlined_call_operand.vmem [shape: f32[1,128], index: 10, kind: input, shape index: {}]   ;;  %s1363_s11 = inlined_call_operand.vmem [shape: f32[16,1], index: 11, kind: output, shape index: {}]  }
   0x1   :  { %17 = vsyncpa [#allocation5], 0 }
   0x2   :  { %18 = vsyncpa [#allocation8], 0 }
   0x3   :  { %19 = vsyncpa [#allocation11], 0  ;;  %s1138_s17 = smov [#allocation4]   ;;  %s998_s21 = scalar_lea.hbm %s1353_s1, 1024 }
   0x4   :  { %s37_s18 = sshll.u32 %s1138_s17, 4  ;;  %p999_p0 = scmp.ne.s32.totalorder %s1353_s1, %s998_s21  ;;  %s38_s18 = int_to_ptr.vmem [resolvable:$true] %s37_s18 }
   0x5   :  { %p1002_p1 = scmp.lt.u32.totalorder %s998_s21, %s1353_s1 }
   0x7   :  { %p1004_p2 = pnand %p1002_p1, %p999_p0 }
   0x9   :  { %1007 = shalt.err (!%p1004_p2)
}
   0xa   :  { %s1008_s26 = scalar_lea.vmem %s38_s18, 1024  ;;  %p1013_p4 = scmp.lt.s32.totalorder %s38_s18, %s38_s18 }
   0xb   :  { %p1009_p3 = scmp.ne.s32.totalorder %s38_s18, %s1008_s26  ;;  %p1014_p5 = scmp.lt.s32.totalorder %s1008_s26, %s1008_s26 }
   0xd   :  { %p1015_p6 = por %p1014_p5, %p1013_p4 }
   0xf   :  { %p1016_p7 = pnand %p1015_p6, %p1009_p3 }
  0x11   :  { %1019 = shalt.err (!%p1016_p7)
}
  0x12   :  { %s1139_s27 = smov 128   ;;  %s1140_s28 = smov 8  }
  0x13   :  { %43 = dma.hbm_to_vmem [thread:$0]  %s1353_s1, 1024, %s38_s18, [#allocation5], %s1139_s27, %s1139_s27, %s1140_s28  }
  0x14   :  { %s1141_s12 = smov [#allocation7]   ;;  %s1142_s14 = smov [#allocation2]  }
  0x15   :  { %s65_s13 = sshll.u32 %s1141_s12, 4  ;;  %s25_s15 = sshll.u32 %s1142_s14, 4  ;;  %s66_s13 = int_to_ptr.vmem [resolvable:$true] %s65_s13  ;;  %s26_s15 = int_to_ptr.vmem [resolvable:$true] %s25_s15 }
  0x16   :  { %s1020_s19 = scalar_lea.hbm %s1357_s5, 1024 }
  0x17   :  { %p1021_p8 = scmp.ne.s32.totalorder %s1357_s5, %s1020_s19  ;;  %p1024_p9 = scmp.lt.u32.totalorder %s1020_s19, %s1357_s5 }
  0x19   :  { %p1026_p10 = pnand %p1024_p9, %p1021_p8 }
  0x1b   :  { %1029 = shalt.err (!%p1026_p10)
}
  0x1c   :  { %s1030_s1 = scalar_lea.vmem %s66_s13, 1024  ;;  %p1035_p12 = scmp.lt.s32.totalorder %s66_s13, %s66_s13 }
  0x1d   :  { %p1031_p11 = scmp.ne.s32.totalorder %s66_s13, %s1030_s1  ;;  %p1036_p13 = scmp.lt.s32.totalorder %s1030_s1, %s1030_s1 }
  0x1f   :  { %p1037_p0 = por %p1036_p13, %p1035_p12 }
  0x21   :  { %p1038_p1 = pnand %p1037_p0, %p1031_p11 }
  0x23   :  { %1041 = shalt.err (!%p1038_p1)
}
  0x24   :  { %s1143_s18 = smov 64   ;;  %s1144_s24 = smov 4  }
  0x25   :  { %71 = dma.hbm_to_vmem [thread:$0]  %s1357_s5, 1024, %s66_s13, [#allocation8], %s1143_s18, %s1143_s18, %s1144_s24  }
  0x26   :  { %s1042_s12 = scalar_lea.hbm %s1352_s0, 256 }
  0x27   :  { %p1043_p2 = scmp.ne.s32.totalorder %s1352_s0, %s1042_s12  ;;  %p1046_p3 = scmp.lt.u32.totalorder %s1042_s12, %s1352_s0 }
  0x29   :  { %p1048_p4 = pnand %p1046_p3, %p1043_p2 }
  0x2b   :  { %1051 = shalt.err (!%p1048_p4)
}
  0x2c   :  { %s1052_s20 = scalar_lea.vmem %s26_s15, 256  ;;  %p1057_p6 = scmp.lt.s32.totalorder %s26_s15, %s26_s15 }
  0x2d   :  { %p1053_p5 = scmp.ne.s32.totalorder %s26_s15, %s1052_s20  ;;  %p1058_p7 = scmp.lt.s32.totalorder %s1052_s20, %s1052_s20 }
  0x2f   :  { %p1059_p8 = por %p1058_p7, %p1057_p6 }
  0x31   :  { %p1060_p9 = pnand %p1059_p8, %p1053_p5 }
  0x33   :  { %1063 = shalt.err (!%p1060_p9)
}
  0x34   :  { %31 = dma.hbm_to_vmem [thread:$0]  %s1352_s0, 256, %s26_s15, [#allocation3], %s1139_s27, %s1139_s27, %s1140_s28  }
  0x35   :  { %s1145_s21 = smov [#allocation6]   ;;  %s1146_s23 = smov [#allocation9]  }
  0x36   :  { %s51_s22 = sshll.u32 %s1145_s21, 4  ;;  %s79_s1 = sshll.u32 %s1146_s23, 4  ;;  %s52_s22 = int_to_ptr.vmem [resolvable:$true] %s51_s22  ;;  %s80_s1 = int_to_ptr.vmem [resolvable:$true] %s79_s1 }
  0x37   :  { %s1064_s29 = scalar_lea.hbm %s1355_s3, 2048 }
  0x38   :  { %p1065_p10 = scmp.ne.s32.totalorder %s1355_s3, %s1064_s29  ;;  %p1068_p11 = scmp.lt.u32.totalorder %s1064_s29, %s1355_s3 }
  0x3a   :  { %p1070_p12 = pnand %p1068_p11, %p1065_p10 }
  0x3c   :  { %1073 = shalt.err (!%p1070_p12)
}
  0x3d   :  { %s1074_s0 = scalar_lea.vmem %s52_s22, 2048  ;;  %p1079_p0 = scmp.lt.s32.totalorder %s52_s22, %s52_s22 }
  0x3e   :  { %p1075_p13 = scmp.ne.s32.totalorder %s52_s22, %s1074_s0  ;;  %p1080_p1 = scmp.lt.s32.totalorder %s1074_s0, %s1074_s0 }
  0x40   :  { %p1081_p2 = por %p1080_p1, %p1079_p0 }
  0x42   :  { %p1082_p3 = pnand %p1081_p2, %p1075_p13 }
  0x44   :  { %1085 = shalt.err (!%p1082_p3)
}
  0x45   :  { %57 = dma.hbm_to_vmem [thread:$0]  %s1355_s3, 2048, %s52_s22, [#allocation5], %s1143_s18, %s1143_s18, %s1144_s24  }
  0x46   :  { %s1086_s19 = scalar_lea.hbm %s1359_s7, 1024 }
  0x47   :  { %p1087_p4 = scmp.ne.s32.totalorder %s1359_s7, %s1086_s19  ;;  %p1090_p5 = scmp.lt.u32.totalorder %s1086_s19, %s1359_s7 }
  0x49   :  { %p1092_p6 = pnand %p1090_p5, %p1087_p4 }
  0x4b   :  { %1095 = shalt.err (!%p1092_p6)
}
  0x4c   :  { %s1096_s23 = scalar_lea.vmem %s80_s1, 1024  ;;  %p1101_p8 = scmp.lt.s32.totalorder %s80_s1, %s80_s1 }
  0x4d   :  { %p1097_p7 = scmp.ne.s32.totalorder %s80_s1, %s1096_s23  ;;  %p1102_p9 = scmp.lt.s32.totalorder %s1096_s23, %s1096_s23 }
  0x4f   :  { %p1103_p10 = por %p1102_p9, %p1101_p8 }
  0x51   :  { %p1104_p11 = pnand %p1103_p10, %p1097_p7 }
  0x53   :  { %1107 = shalt.err (!%p1104_p11)
}
  0x54   :  { %85 = dma.hbm_to_vmem [thread:$0]  %s1359_s7, 1024, %s80_s1, [#allocation8], %s1143_s18, %s1143_s18, %s1144_s24  }
  0x55   :  { %s1147_s25 = smov [#allocation10]   ;;  %s1108_s12 = scalar_lea.hbm %s1361_s9, 1024 }
  0x56   :  { %s93_s26 = sshll.u32 %s1147_s25, 4  ;;  %p1109_p12 = scmp.ne.s32.totalorder %s1361_s9, %s1108_s12  ;;  %s94_s26 = int_to_ptr.vmem [resolvable:$true] %s93_s26 }
  0x57   :  { %p1112_p13 = scmp.lt.u32.totalorder %s1108_s12, %s1361_s9 }
  0x59   :  { %p1114_p0 = pnand %p1112_p13, %p1109_p12 }
  0x5b   :  { %1117 = shalt.err (!%p1114_p0)
}
  0x5c   :  { %s1118_s28 = scalar_lea.vmem %s94_s26, 1024  ;;  %p1123_p2 = scmp.lt.s32.totalorder %s94_s26, %s94_s26 }
  0x5d   :  { %p1119_p1 = scmp.ne.s32.totalorder %s94_s26, %s1118_s28  ;;  %p1124_p3 = scmp.lt.s32.totalorder %s1118_s28, %s1118_s28 }
  0x5f   :  { %p1125_p4 = por %p1124_p3, %p1123_p2 }
  0x61   :  { %p1126_p5 = pnand %p1125_p4, %p1119_p1 }
  0x63   :  { %1129 = shalt.err (!%p1126_p5)
}
  0x64   :  { %99 = dma.hbm_to_vmem [thread:$0]  %s1361_s9, 1024, %s94_s26, [#allocation11], %s1143_s18, %s1143_s18, %s1144_s24  }
  0x65   :  { %1130 = dma.done.wait [#allocation3], 256  }
  0x66   :  { %1131 = vsyncadd [#allocation3], 4294967040 }
  0x67   :  { %1132 = dma.done.wait [#allocation5], 3072  }
  0x68   :  { %1133 = vsyncadd [#allocation5], 4294964224 }
  0x69   :  { %1134 = dma.done.wait [#allocation8], 2048  }
  0x6a   :  { %1135 = vsyncadd [#allocation8], 4294965248 }
  0x6b   :  { %1136 = dma.done.wait [#allocation11], 1024  }
  0x6c   :  { %1137 = vsyncadd [#allocation11], 4294966272  ;;  %v1148_v0 = vmov 0   ;;  %v946_v1 = vld [vmem:[#allocation4 + $0x4] ss:$8 sps:$4 sm:$0xff]   ;;  %v121_v12 = vld [vmem:[#allocation2] sm:$0xff]  ;;  %v134_v34 = vlaneseq }
  0x6d   :  { %220 = vmatprep.mubr.bf16.mxu0 %v1148_v0  ;;  %v948_v2 = vld [vmem:[#allocation4] ss:$8 sps:$4 sm:$0xff]   ;;  %188 = vmatprep.subr.bf16.mxu0 %v946_v1  ;;  %v949_v3 = vld [vmem:[#allocation4 + $0x14] ss:$8 sps:$4 sm:$0xff]   ;;  %v951_v4 = vld [vmem:[#allocation4 + $0x10] ss:$8 sps:$4 sm:$0xff]  }
  0x6e   :  { %189 = vmatpush1.bf16.msra.mxu0 %v948_v2  ;;  %v952_v5 = vld [vmem:[#allocation4 + $0x24] ss:$8 sps:$4 sm:$0xff]   ;;  %v954_v6 = vld [vmem:[#allocation4 + $0x20] ss:$8 sps:$4 sm:$0xff]   ;;  %v955_v7 = vld [vmem:[#allocation4 + $0x34] ss:$8 sps:$4 sm:$0xff]  }
  0x6f   :  { %190 = vmatprep.subr.bf16.mxu0 %v949_v3  ;;  %v958_v8 = vld [vmem:[#allocation6 + $0x40] sm:$0xff]   ;;  %v960_v10 = vld [vmem:[#allocation6 + $0x48] sm:$0xff]   ;;  %v957_v11 = vld [vmem:[#allocation4 + $0x30] ss:$8 sps:$4 sm:$0xff]   ;;  %vm184_vm0 = vcmask 523264   ;;  %v1149_v29 = vmov 0.0  }
  0x70   :  { %v959_v9 = vld [vmem:[#allocation6] sm:$0xff]   ;;  %824 = vmatprep.subr.bf16.mxu1 %v958_v8  ;;  %v961_v13 = vld [vmem:[#allocation6 + $0x8] sm:$0xff]   ;;  %v962_v14 = vld [vmem:[#allocation6 + $0x50] sm:$0xff]   ;;  %v135_v35 = vshrl.u32 %v134_v34, 7  ;;  %vm1150_vm1 = vmmov 0   ;;  %vm760_vm2 = vcmask 7168  }
  0x71   :  { %825 = vmatpush3.bf16.msra.mxu1 %v959_v9  ;;  %v122_v15 = vld [vmem:[#allocation2 + $0x8] sm:$0xff]  ;;  %v963_v16 = vld [vmem:[#allocation6 + $0x10] sm:$0xff]   ;;  %v966_v20 = vld [vmem:[#allocation6 + $0x60] sm:$0xff]  }
  0x72   :  { %191 = vmatpush1.bf16.msra.mxu0 %v951_v4  ;;  %826 = vmatprep.subr.bf16.mxu1 %v960_v10  ;;  %v123_v17 = vpack.c.bf16 %v122_v15, %v121_v12  ;;  %v964_v18 = vld [vmem:[#allocation6 + $0x58] sm:$0xff]   ;;  %v967_v21 = vld [vmem:[#allocation6 + $0x20] sm:$0xff]   ;;  %v968_v22 = vld [vmem:[#allocation6 + $0x68] sm:$0xff]   ;;  %v136_v36 = vsub.s32 0, %v135_v35  ;;  %v140_v38 = vsub.s32 1, %v135_v35 }
  0x73   :  { %192 = vmatprep.subr.bf16.mxu0 %v952_v5  ;;  %v965_v19 = vld [vmem:[#allocation6 + $0x18] sm:$0xff]   ;;  %v969_v23 = vld [vmem:[#allocation6 + $0x28] sm:$0xff]   ;;  %v970_v24 = vld [vmem:[#allocation6 + $0x70] sm:$0xff]  }
  0x74   :  { %v971_v25 = vld [vmem:[#allocation6 + $0x30] sm:$0xff]   ;;  %v972_v26 = vld [vmem:[#allocation6 + $0x78] sm:$0xff]   ;;  %v974_v28 = vld [vmem:[#allocation7] sm:$0xff]  }
  0x75   :  { %827 = vmatpush3.bf16.msra.mxu1 %v961_v13  ;;  %v973_v27 = vld [vmem:[#allocation6 + $0x38] sm:$0xff]   ;;  %v975_v30 = vld [vmem:[#allocation7 + $0x8] sm:$0xff]   ;;  %v976_v31 = vld [vmem:[#allocation7 + $0x10] sm:$0xff]  }
  0x76   :  { %193 = vmatpush1.bf16.msra.mxu0 %v954_v6  ;;  %828 = vmatprep.subr.bf16.mxu1 %v962_v14  ;;  %v977_v32 = vld [vmem:[#allocation7 + $0x18] sm:$0xff]   ;;  %v978_v33 = vld [vmem:[#allocation7 + $0x20] sm:$0xff]   ;;  %v979_v55 = vld [vmem:[#allocation7 + $0x28] sm:$0xff]  }
  0x77   :  { %194 = vmatprep.subr.bf16.mxu0 %v955_v7  ;;  %v132_v37 = vld [vmem:[%s1354_s2] sm:$0x3]  ;;  %v980_v56 = vld [vmem:[#allocation7 + $0x30] sm:$0xff]   ;;  %v981_v57 = vld [vmem:[#allocation7 + $0x38] sm:$0xff]  }
  0x78   :  { %v137_v39 = vrot.slane %v132_v37, %v136_v36  ;;  %v141_v40 = vrot.slane %v132_v37, %v140_v38  ;;  %v982_v58 = vld [vmem:[#allocation9] sm:$0xff]   ;;  %v983_v59 = vld [vmem:[#allocation9 + $0x8] sm:$0xff]   ;;  %v984_v60 = vld [vmem:[#allocation9 + $0x10] sm:$0xff]  }
  0x79   :  { %829 = vmatpush3.bf16.msra.mxu1 %v963_v16  ;;  %v985_v61 = vld [vmem:[#allocation9 + $0x18] sm:$0xff]   ;;  %v986_v62 = vld [vmem:[#allocation9 + $0x20] sm:$0xff]   ;;  %v987_v63 = vld [vmem:[#allocation9 + $0x28] sm:$0xff]  }
  0x7a   :  { %195 = vmatpush1.bf16.msra.mxu0 %v957_v11  ;;  %830 = vmatprep.subr.bf16.mxu1 %v964_v18  ;;  %v780_v1 = vld [vmem:[%s1356_s4] ss:$0 sm:$0xff]  ;;  %v988_v12 = vld [vmem:[#allocation9 + $0x30] sm:$0xff]   ;;  %v989_v13 = vld [vmem:[#allocation9 + $0x38] sm:$0xff]  }
  0x7b   :  { %873 = vmatprep.subr.bf16.mxu0 %v1149_v29  ;;  %v990_v14 = vld [vmem:[#allocation10] sm:$0xff]   ;;  %v991_v15 = vld [vmem:[#allocation10 + $0x8] sm:$0xff]   ;;  %v992_v16 = vld [vmem:[#allocation10 + $0x10] sm:$0xff]  }
  0x7c   :  { %v994_v18 = vld [vmem:[#allocation10 + $0x20] sm:$0xff]  }
  0x7d   :  { %779 = vmatmul.mubr.msk.bf16.vlgmr.msra.gmra.mrb[0].mxu0 %vm184_vm0, %v123_v17  ;;  %831 = vmatpush3.bf16.msra.mxu1 %v965_v19  ;;  %v993_v17 = vld [vmem:[#allocation10 + $0x18] sm:$0xff]   ;;  %v995_v19 = vld [vmem:[#allocation10 + $0x28] sm:$0xff]  }
  0x7e   :  { %832 = vmatprep.subr.bf16.mxu1 %v966_v20  ;;  %874 = vmatpush3.bf16.msra.mxu0 %v974_v28  ;;  %v797_v20 = vld [vmem:[%s1358_s6] ss:$0 sm:$0xff] }
  0x7f   :  { %875 = vmatprep.subr.bf16.mxu0 %v1149_v29  ;;  %889 = vmatprep.mubr.msk.bf16.mxu0 %vm1150_vm1, %v1149_v29 }
  0x81   :  { %833 = vmatpush3.bf16.msra.mxu1 %v967_v21 }
  0x82   :  { %834 = vmatprep.subr.bf16.mxu1 %v968_v22  ;;  %876 = vmatpush3.bf16.msra.mxu0 %v975_v30 }
  0x83   :  { %877 = vmatprep.subr.bf16.mxu0 %v1149_v29 }
  0x85   :  { %835 = vmatpush3.bf16.msra.mxu1 %v969_v23 }
  0x86   :  { %836 = vmatprep.subr.bf16.mxu1 %v970_v24  ;;  %878 = vmatpush3.bf16.msra.mxu0 %v976_v31  ;;  %v996_v31 = vld [vmem:[#allocation10 + $0x30] sm:$0xff]  }
  0x87   :  { %879 = vmatprep.subr.bf16.mxu0 %v1149_v29 }
  0x89   :  { %837 = vmatpush3.bf16.msra.mxu1 %v971_v25 }
  0x8a   :  { %838 = vmatprep.subr.bf16.mxu1 %v972_v26  ;;  %880 = vmatpush3.bf16.msra.mxu0 %v977_v32  ;;  %v997_v32 = vld [vmem:[#allocation10 + $0x38] sm:$0xff]  }
  0x8b   :  { %881 = vmatprep.subr.bf16.mxu0 %v1149_v29 }
  0x8d   :  { %839 = vmatpush3.bf16.msra.mxu1 %v973_v27 }
  0x8e   :  { %893 = vmatprep.subr.bf16.mxu1 %v1149_v29  ;;  %882 = vmatpush3.bf16.msra.mxu0 %v978_v33  ;;  %v806_v33 = vld [vmem:[%s1360_s8] ss:$0 sm:$0xff] }
  0x8f   :  { %883 = vmatprep.subr.bf16.mxu0 %v1149_v29 }
  0x92   :  { %884 = vmatpush3.bf16.msra.mxu0 %v979_v55 }
  0x93   :  { %885 = vmatprep.subr.bf16.mxu0 %v1149_v29 }
  0x96   :  { %886 = vmatpush3.bf16.msra.mxu0 %v980_v56 }
  0x97   :  { %887 = vmatprep.subr.bf16.mxu0 %v1149_v29 }
  0x9a   :  { %888 = vmatpush3.bf16.msra.mxu0 %v981_v57 }
  0x9b   :  { %913 = vmatprep.subr.bf16.mxu0 %v1149_v29 }
 0x150   :  { %v222_v41 = vpop.f32.mrb[0].mxu0 }
 0x151   :  { %v223_v42 = vadd.f32 %v222_v41, %v137_v39  ;;  %v224_v43 = vpop.f32.mrb[1].mxu0 }
 0x152   :  { %v225_v44 = vadd.f32 %v224_v43, %v141_v40  ;;  %v226_v45 = vpop.f32.mrb[2].mxu0 }
 0x153   :  { %v227_v46 = vadd.f32 %v226_v45, %v137_v39  ;;  %v228_v47 = vpop.f32.mrb[3].mxu0  ;;  %v231_v49 = vmax.f32 %v223_v42, 0.0 }
 0x154   :  { %v229_v48 = vadd.f32 %v228_v47, %v141_v40  ;;  %v232_v51 = vmax.f32 %v225_v44, 0.0 }
 0x155   :  { %v233_v50 = vmax.f32 %v227_v46, 0.0 }
 0x156   :  { %v234_v52 = vmax.f32 %v229_v48, 0.0 }
 0x157   :  { %v235_v53 = vpack.c.bf16 %v233_v50, %v231_v49 }
 0x158   :  { %v236_v54 = vpack.c.bf16 %v234_v52, %v232_v51 }
 0x15a   :  { %404 = vmatprep.mubr.bf16.mxu1 %v236_v54 }
 0x15b   :  { %405 = vmatmul.mubr.bf16.vlgmr.msra.gmra.mrb[0].mxu1 %v235_v53 }
 0x15c   :  { %909 = vmatprep.mubr.msk.bf16.mxu1 %vm1150_vm1, %v1149_v29  ;;  %894 = vmatpush3.bf16.msra.mxu1 %v982_v58 }
 0x15d   :  { %895 = vmatprep.subr.bf16.mxu1 %v1149_v29 }
 0x160   :  { %896 = vmatpush3.bf16.msra.mxu1 %v983_v59 }
 0x161   :  { %897 = vmatprep.subr.bf16.mxu1 %v1149_v29 }
 0x164   :  { %898 = vmatpush3.bf16.msra.mxu1 %v984_v60 }
 0x165   :  { %899 = vmatprep.subr.bf16.mxu1 %v1149_v29 }
 0x168   :  { %900 = vmatpush3.bf16.msra.mxu1 %v985_v61 }
 0x169   :  { %901 = vmatprep.subr.bf16.mxu1 %v1149_v29 }
 0x16c   :  { %902 = vmatpush3.bf16.msra.mxu1 %v986_v62 }
 0x16d   :  { %903 = vmatprep.subr.bf16.mxu1 %v1149_v29 }
 0x170   :  { %904 = vmatpush3.bf16.msra.mxu1 %v987_v63 }
 0x171   :  { %905 = vmatprep.subr.bf16.mxu1 %v1149_v29 }
 0x174   :  { %906 = vmatpush3.bf16.msra.mxu1 %v988_v12 }
 0x175   :  { %907 = vmatprep.subr.bf16.mxu1 %v1149_v29 }
 0x178   :  { %908 = vmatpush3.bf16.msra.mxu1 %v989_v13 }
 0x22e   :  { %v840_v0 = vpop.f32.mrb[0].mxu1 }
 0x22f   :  { %v841_v2 = vpop.f32.mrb[1].mxu1 }
 0x230   :  { %v842_v3 = vadd.f32 %v841_v2, %v840_v0  ;;  %v843_v4 = vpop.f32.mrb[2].mxu1 }
 0x231   :  { %v844_v5 = vpop.f32.mrb[3].mxu1 }
 0x232   :  { %v407_v6 = vadd.f32 %v842_v3, %v780_v1  ;;  %v845_v7 = vadd.f32 %v844_v5, %v843_v4 }
 0x234   :  { %v410_v8 = vadd.f32 %v845_v7, %v780_v1  ;;  %v413_v9 = vmax.f32 %v407_v6, 0.0 }
 0x236   :  { %v414_v10 = vmax.f32 %v410_v8, 0.0 }
 0x238   :  { %v415_v11 = vpack.c.bf16 %v414_v10, %v413_v9 }
 0x23a   :  { %890 = vmatmul.mubr.bf16.vlgmr.msra.gmra.mrb[4].mxu0 %v415_v11 }
 0x23b   :  { %929 = vmatprep.mubr.msk.bf16.mxu0 %vm1150_vm1, %v1149_v29  ;;  %914 = vmatpush3.bf16.msra.mxu0 %v990_v14 }
 0x23c   :  { %915 = vmatprep.subr.bf16.mxu0 %v1149_v29 }
 0x23f   :  { %916 = vmatpush3.bf16.msra.mxu0 %v991_v15 }
 0x240   :  { %917 = vmatprep.subr.bf16.mxu0 %v1149_v29 }
 0x243   :  { %918 = vmatpush3.bf16.msra.mxu0 %v992_v16 }
 0x244   :  { %919 = vmatprep.subr.bf16.mxu0 %v1149_v29 }
 0x247   :  { %920 = vmatpush3.bf16.msra.mxu0 %v993_v17 }
 0x248   :  { %921 = vmatprep.subr.bf16.mxu0 %v1149_v29 }
 0x24b   :  { %922 = vmatpush3.bf16.msra.mxu0 %v994_v18 }
 0x24c   :  { %923 = vmatprep.subr.bf16.mxu0 %v1149_v29 }
 0x24f   :  { %924 = vmatpush3.bf16.msra.mxu0 %v995_v19 }
 0x250   :  { %925 = vmatprep.subr.bf16.mxu0 %v1149_v29 }
 0x253   :  { %926 = vmatpush3.bf16.msra.mxu0 %v996_v31 }
 0x254   :  { %927 = vmatprep.subr.bf16.mxu0 %v1149_v29  ;;  %v823_v29 = vld [vmem:[%s1362_s10] ss:$0 sm:$0xff] }
 0x257   :  { %928 = vmatpush3.bf16.msra.mxu0 %v997_v32 }
 0x30d   :  { %v521_v21 = vpop.f32.mrb[4].mxu0 }
 0x30e   :  { %v522_v22 = vadd.f32 %v797_v20, %v521_v21  ;;  %v891_v23 = vpop.f32.mrb[5].mxu0 }
 0x30f   :  { %v524_v24 = vpop.f32.mrb[6].mxu0 }
 0x310   :  { %v525_v25 = vadd.f32 %v797_v20, %v524_v24  ;;  %v892_v26 = vpop.f32.mrb[7].mxu0  ;;  %v528_v27 = vmax.f32 %v522_v22, 0.0 }
 0x312   :  { %v529_v28 = vmax.f32 %v525_v25, 0.0 }
 0x314   :  { %v530_v30 = vpack.c.bf16 %v529_v28, %v528_v27 }
 0x316   :  { %910 = vmatmul.mubr.bf16.vlgmr.msra.gmra.mrb[4].mxu1 %v530_v30 }
 0x3e9   :  { %v636_v34 = vpop.f32.mrb[4].mxu1 }
 0x3ea   :  { %v637_v35 = vadd.f32 %v806_v33, %v636_v34  ;;  %v911_v36 = vpop.f32.mrb[5].mxu1 }
 0x3eb   :  { %v639_v37 = vpop.f32.mrb[6].mxu1 }
 0x3ec   :  { %v640_v38 = vadd.f32 %v806_v33, %v639_v37  ;;  %v912_v39 = vpop.f32.mrb[7].mxu1  ;;  %v643_v40 = vmax.f32 %v637_v35, 0.0 }
 0x3ee   :  { %v644_v41 = vmax.f32 %v640_v38, 0.0 }
 0x3f0   :  { %v645_v42 = vpack.c.bf16 %v644_v41, %v643_v40 }
 0x3f2   :  { %930 = vmatmul.mubr.bf16.vlgmr.msra.gmra.mrb[8].mxu0 %v645_v42 }
 0x4c5   :  { %v744_v43 = vpop.f32.mrb[8].mxu0 }
 0x4c6   :  { %v758_v44 = vadd.f32 %v823_v29, %v744_v43  ;;  %v931_v45 = vpop.f32.mrb[9].mxu0 }
 0x4c7   :  { %v747_v46 = vpop.f32.mrb[10].mxu0 }
 0x4c8   :  { %761 = vst.msk [vmem:[%s1363_s11] sm:$0xff] %vm760_vm2, %v758_v44  ;;  %v759_v47 = vadd.f32 %v823_v29, %v747_v46  ;;  %v932_v48 = vpop.f32.mrb[11].mxu0 }
 0x4ca   :  { %762 = vst.msk [vmem:[%s1363_s11 + $0x8] sm:$0xff] %vm760_vm2, %v759_v47 }
 0x4cb   :  { %767 = vsyncpa [#allocation3], 1 }
 0x4cc   :  { %768 = vsyncpa [#allocation5], 1 }
 0x4cd   :  { %769 = vsyncpa [#allocation8], 1 }
 0x4ce   :  { %770 = vsyncpa [#allocation11], 1 }

</bundles_post_ra>
